<compile_context>
chip_gen: v5e
topology: v5e:2x2
jax: 0.10.0
libtpu: 0.0.40
codegen_flags: <defaults>
</compile_context>

<pallas_src>
import jax
import jax.numpy as jnp
from jax.experimental import pallas as pl
from jax.experimental.pallas import tpu as pltpu

OBS_DIM = 4      # CartPole observation size
HIDDEN = 128     # base net output features (Actor.linear expects 128 in)
N_ACT = 2        # number of actions
LANE = 128       # lane-dense output width (padded; real outputs in lanes 0..1)

# Packed parameter row layout inside the single (8, LANE) buffer.
ROW_B1 = OBS_DIM          # 4: bias of base Linear
ROW_WD = OBS_DIM + 1      # 5: fused head weight column  w2[:,0] - w2[:,1]
ROW_BD = OBS_DIM + 2      # 6: fused head bias           b2[0]   - b2[1]   (broadcast)


def actor_kernel(x_ref, p_ref, out_ref):
    # x_ref:   (TILE_B, OBS_DIM)
    # p_ref:   (8, LANE) packed parameters
    # out_ref: (TILE_B, LANE) lane-dense probabilities (lane0=p0, lane1=p1)
    x = x_ref[...]

    w1 = p_ref[0:OBS_DIM, :]                 # (4, 128)
    b1 = p_ref[ROW_B1:ROW_B1 + 1, :]         # (1, 128)
    wd = p_ref[ROW_WD:ROW_WD + 1, :]         # (1, 128) fused head column
    bd = p_ref[ROW_BD:ROW_BD + 1, 0:1]       # (1, 1)   fused head bias

    # base: Linear(4, 128) + ReLU  (single small MXU push)
    h = jnp.dot(x, w1, preferred_element_type=jnp.float32) + b1
    h = jnp.maximum(h, 0.0)

    # head as sigmoid-of-difference (VPU mul + XLU lane-reduce, no N=2 matmul)
    d = jnp.sum(h * wd, axis=-1, keepdims=True) + bd          # (TILE_B, 1)
    p0 = pl.reciprocal(1.0 + jnp.exp(-d), approx=True)        # sigmoid(d), EUP
    p1 = 1.0 - p0

    # Lane-dense store: full 128-wide block, real probabilities in lanes 0 and 1.
    lane = jax.lax.broadcasted_iota(jnp.int32, out_ref.shape, 1)
    out_ref[...] = jnp.where(lane == 0, p0,
                             jnp.where(lane == 1, p1, 0.0)).astype(out_ref.dtype)


def pack_params(w1, b1, w2, b2):
    """Pack all Actor parameters into one sublane-aligned (8, LANE) buffer."""
    wd = w2[:, 0] - w2[:, 1]          # (128,) fused head weight column
    bd = b2[0] - b2[1]                # scalar fused head bias
    params = jnp.zeros((8, LANE), jnp.float32)
    params = params.at[0:OBS_DIM, :].set(w1)
    params = params.at[ROW_B1, :].set(b1)
    params = params.at[ROW_WD, :].set(wd)
    params = params.at[ROW_BD, :].set(bd)   # broadcast scalar across lanes
    return params


def actor_forward(x, params, *, max_tile_b=512):
    """x: (B, OBS_DIM) float32, params: packed (8, LANE). Returns (B, N_ACT) probs."""
    B = x.shape[0]
    # Batch tile: multiple of 8 sublanes, capped so it fits v7x's smaller VMEM.
    tile_b = min(max_tile_b, ((B + 7) // 8) * 8)
    n_tiles = -(-B // tile_b)
    Bp = n_tiles * tile_b
    if Bp != B:
        x = jnp.pad(x, ((0, Bp - B), (0, 0)))

    out = pl.pallas_call(
        actor_kernel,
        out_shape=jax.ShapeDtypeStruct((Bp, LANE), jnp.float32),
        grid=(n_tiles,),
        in_specs=[
            pl.BlockSpec((tile_b, OBS_DIM), lambda i: (i, 0)),
            pl.BlockSpec((8, LANE), lambda i: (0, 0)),
        ],
        out_specs=pl.BlockSpec((tile_b, LANE), lambda i: (i, 0)),
        compiler_params=pltpu.CompilerParams(
            dimension_semantics=("parallel",)),
    )(x, params)
    return out[:B, :N_ACT]


def init_params(key):
    # Deterministic, PyTorch-style uniform(-1/sqrt(fan_in), 1/sqrt(fan_in)) init.
    k1, k2, k3, k4 = jax.random.split(key, 4)
    bound1 = 1.0 / jnp.sqrt(float(OBS_DIM))
    bound2 = 1.0 / jnp.sqrt(float(HIDDEN))
    # Stored as (in, out) == transpose of PyTorch's (out, in).
    w1 = jax.random.uniform(k1, (OBS_DIM, HIDDEN), jnp.float32, -bound1, bound1)
    b1 = jax.random.uniform(k2, (HIDDEN,), jnp.float32, -bound1, bound1)
    w2 = jax.random.uniform(k3, (HIDDEN, N_ACT), jnp.float32, -bound2, bound2)
    b2 = jax.random.uniform(k4, (N_ACT,), jnp.float32, -bound2, bound2)
    return w1, b1, w2, b2


def reference_forward(x, w1, b1, w2, b2):
    h = jnp.maximum(x @ w1 + b1, 0.0)
    logits = h @ w2 + b2
    return jax.nn.softmax(logits, axis=1)


if __name__ == "__main__":
    key = jax.random.PRNGKey(0)
    k_params, k_x = jax.random.split(key)
    w1, b1, w2, b2 = init_params(k_params)
    params = pack_params(w1, b1, w2, b2)

    B = 8  # small batch of CartPole observations
    x = jax.random.normal(k_x, (B, OBS_DIM), jnp.float32)

    probs = actor_forward(x, params)
    probs = jax.block_until_ready(probs)

    ref = reference_forward(x, w1, b1, w2, b2)
    assert probs.shape == (B, N_ACT)
    # approx=True reciprocal (EUP) -> relax tolerance vs exact softmax reference.
    assert jnp.allclose(probs, ref, atol=2e-3, rtol=2e-3), "mismatch vs reference"
    assert jnp.allclose(jnp.sum(probs, axis=1), 1.0, atol=1e-5), "rows must sum to 1"

    print("KERNEL_OK")
</pallas_src>

<mosaic_0001>
module attributes {stable_mosaic.version = 11 : i64} {
  func.func @actor_kernel(%arg0: i32, %arg1: memref<8x4xf32, #tpu.memory_space<vmem>>, %arg2: memref<8x128xf32, #tpu.memory_space<vmem>>, %arg3: memref<8x128xf32, #tpu.memory_space<vmem>>) attributes {dimension_semantics = [#tpu.dimension_semantics<parallel>], iteration_bounds = array<i64: 1>, scalar_prefetch = 0 : i64, scratch_operands = 0 : i64, tpu.core_type = #tpu.core_type<tc>, window_params = [{transform_indices = @transform_0, window_bounds = array<i64: 8, 4>}, {pipeline_mode = #tpu.pipeline_mode<synchronous>, transform_indices = @transform_1, window_bounds = array<i64: 8, 128>}, {transform_indices = @transform_2, window_bounds = array<i64: 8, 128>}]} {
    %c0 = arith.constant 0 : index
    %c0_0 = arith.constant 0 : index
    %0 = vector.load %arg1[%c0, %c0_0] : memref<8x4xf32, #tpu.memory_space<vmem>>, vector<8x4xf32>
    %c0_1 = arith.constant 0 : index
    %c0_2 = arith.constant 0 : index
    %1 = vector.load %arg2[%c0_1, %c0_2] : memref<8x128xf32, #tpu.memory_space<vmem>>, vector<4x128xf32>
    %c4 = arith.constant 4 : index
    %c0_3 = arith.constant 0 : index
    %2 = vector.load %arg2[%c4, %c0_3] : memref<8x128xf32, #tpu.memory_space<vmem>>, vector<1x128xf32>
    %c5 = arith.constant 5 : index
    %c0_4 = arith.constant 0 : index
    %3 = vector.load %arg2[%c5, %c0_4] : memref<8x128xf32, #tpu.memory_space<vmem>>, vector<1x128xf32>
    %c6 = arith.constant 6 : index
    %c0_5 = arith.constant 0 : index
    %4 = vector.load %arg2[%c6, %c0_5] : memref<8x128xf32, #tpu.memory_space<vmem>>, vector<1x1xf32>
    %cst = arith.constant dense<0.000000e+00> : vector<8x128xf32>
    %5 = tpu.matmul %0, %1, %cst {dimension_numbers = #tpu.dot_dimension_numbers<[1], [0], [0], [1], [0, 0, 1, 1], [], []>} : vector<8x4xf32>, vector<4x128xf32>, vector<8x128xf32> -> vector<8x128xf32>
    %6 = vector.broadcast %2 : vector<1x128xf32> to vector<8x128xf32>
    %7 = arith.addf %5, %6 : vector<8x128xf32>
    %cst_6 = arith.constant 0.000000e+00 : f32
    %8 = vector.broadcast %cst_6 : f32 to vector<8x128xf32>
    %9 = arith.maximumf %7, %8 : vector<8x128xf32>
    %10 = vector.broadcast %3 : vector<1x128xf32> to vector<8x128xf32>
    %11 = arith.mulf %9, %10 : vector<8x128xf32>
    %cst_7 = arith.constant dense<0.000000e+00> : vector<8xf32>
    %12 = vector.multi_reduction <add>, %11, %cst_7 [1] : vector<8x128xf32> to vector<8xf32>
    %13 = vector.shape_cast %12 : vector<8xf32> to vector<8x1xf32>
    %14 = vector.broadcast %4 : vector<1x1xf32> to vector<8x1xf32>
    %15 = arith.addf %13, %14 : vector<8x1xf32>
    %cst_8 = arith.constant 0.000000e+00 : f32
    %16 = vector.broadcast %cst_8 : f32 to vector<8x1xf32>
    %17 = arith.subf %16, %15 : vector<8x1xf32>
    %18 = math.exp %17 : vector<8x1xf32>
    %cst_9 = arith.constant 1.000000e+00 : f32
    %19 = vector.broadcast %cst_9 : f32 to vector<8x1xf32>
    %20 = arith.addf %19, %18 : vector<8x1xf32>
    %21 = tpu.reciprocal %20 {approx = true} : vector<8x1xf32> -> vector<8x1xf32>
    %cst_10 = arith.constant 1.000000e+00 : f32
    %22 = vector.broadcast %cst_10 : f32 to vector<8x1xf32>
    %23 = arith.subf %22, %21 : vector<8x1xf32>
    %24 = tpu.iota {dimensions = array<i32: 1>} : vector<8x128xi32>
    %c0_i32 = arith.constant 0 : i32
    %25 = vector.broadcast %c0_i32 : i32 to vector<8x128xi32>
    %26 = arith.cmpi eq, %24, %25 : vector<8x128xi32>
    %c1_i32 = arith.constant 1 : i32
    %27 = vector.broadcast %c1_i32 : i32 to vector<8x128xi32>
    %28 = arith.cmpi eq, %24, %27 : vector<8x128xi32>
    %cst_11 = arith.constant 0.000000e+00 : f32
    %29 = vector.shape_cast %23 : vector<8x1xf32> to vector<8x1xf32>
    %30 = vector.broadcast %29 : vector<8x1xf32> to vector<8x128xf32>
    %31 = vector.broadcast %cst_11 : f32 to vector<8x128xf32>
    %32 = arith.select %28, %30, %31 : vector<8x128xi1>, vector<8x128xf32>
    %33 = vector.shape_cast %21 : vector<8x1xf32> to vector<8x1xf32>
    %34 = vector.broadcast %33 : vector<8x1xf32> to vector<8x128xf32>
    %35 = arith.select %26, %34, %32 : vector<8x128xi1>, vector<8x128xf32>
    %c0_12 = arith.constant 0 : index
    %c0_13 = arith.constant 0 : index
    %36 = vector.load %arg3[%c0_12, %c0_13] : memref<8x128xf32, #tpu.memory_space<vmem>>, vector<8x128xf32>
    tpu.vector_store %arg3[%c0_12, %c0_13], %35 {strides = array<i32>} : memref<8x128xf32, #tpu.memory_space<vmem>>, vector<8x128xf32>,
    return
  }
  func.func @transform_0(%arg0: i32) -> (i32, i32) {
    %c0_i32 = arith.constant 0 : i32
    %c0_i32_0 = arith.constant 0 : i32
    return %arg0, %c0_i32 : i32, i32
  }
  func.func @transform_1(%arg0: i32) -> (i32, i32) {
    %c0_i32 = arith.constant 0 : i32
    %c0_i32_0 = arith.constant 0 : i32
    %c0_i32_1 = arith.constant 0 : i32
    return %c0_i32, %c0_i32_0 : i32, i32
  }
  func.func @transform_2(%arg0: i32) -> (i32, i32) {
    %c0_i32 = arith.constant 0 : i32
    %c0_i32_0 = arith.constant 0 : i32
    return %arg0, %c0_i32 : i32, i32
  }
}

</mosaic_0001>

<bundles_post_ra>
// kernel: tpu_custom_call.1
= control target key start
LH: loop header
LB: loop body
LE: loop exit
PB: predicated region body
PF: predicated region fallthrough
CT: control target
= control target key end

     0   :  { %vm22_vm0 = vcmask 1043456   ;;  %vm18_vm1 = vcmask 31744   ;;  %s166_s0 = inlined_call_operand.vmem [shape: f32[8,4], index: 0, kind: input, shape index: {}]   ;;  %s167_s1 = inlined_call_operand.vmem [shape: f32[8,128], index: 1, kind: input, shape index: {}]   ;;  %s168_s2 = inlined_call_operand.hbm [shape: f32[8,128], index: 2, kind: output, shape index: {}]  }
   0x1   :  { %v13_v0 = vld [vmem:[%s167_s1] sm:$0xf] }
   0x2   :  { %v12_v1 = vld [vmem:[%s166_s0] sm:$0xff]  ;;  %92 = vmatpush.msk.msra.mxu0 %vm22_vm0, %v13_v0 }
   0x3   :  { %93 = vmatmul.msk.f32.vlgmr.msra.gmra.mxu0 %vm18_vm1, %v12_v1 }
   0x4   :  { %7 = vsyncpa [#allocation3], 0  ;;  %v98_v2 = vld [vmem:[%s167_s1 + $0x4] ss:$0 sm:$0xff]  ;;  %v99_v5 = vld [vmem:[%s167_s1 + $0x5] ss:$0 sm:$0xff]  ;;  %v59_v18 = vlaneseq }
   0x5   :  { %v131_v8 = vmov 0   ;;  %v100_v9 = vld [vmem:[%s167_s1 + $0x6] ss:$0 sm:$0xff]  ;;  %s132_s18 = smov [#allocation2]   ;;  %s83_s1 = sshll.u32 %s168_s2, 4  ;;  %s84_s1 = int_to_ptr.hbm [resolvable:$true] %s83_s1 }
   0x6   :  { %97 = vset.pattern.permute.xlu1 %v131_v8  ;;  %96 = vset.pattern.permute.xlu0 %v131_v8  ;;  %v60_v19 = vand.u32 127, %v59_v18  ;;  %s81_s19 = sshll.u32 %s132_s18, 4  ;;  %s82_s19 = int_to_ptr.vmem [resolvable:$true] %s81_s19 }
   0x8   :  { %vm62_vm2 = vcmp.eq.s32.totalorder %v60_v19, 1  ;;  %vm61_vm3 = vcmp.eq.s32.totalorder %v60_v19, 0 }
  0x80   :  { %v43_v3 = vpop.f32.mrf.mxu0 }
  0x81   :  { %v44_v4 = vadd.f32 %v98_v2, %v43_v3 }
  0x83   :  { %v46_v6 = vmax.f32 %v44_v4, 0.0 }
  0x85   :  { %v48_v7 = vmul.f32 %v99_v5, %v46_v6 }
  0x87   :  { %49 = vadd.xlane.f32.xlu0 %v48_v7 }
  0xfa   :  { %v50_v10 = vpop.xlane.xlu0 %49 }
  0xfb   :  { %v52_v11 = vadd.f32 %v100_v9, %v50_v10 }
  0xfd   :  { %v53_v12 = vsub.f32 0.0, %v52_v11 }
  0xff   :  { %v54_v13 = vmul.f32 1.442695, %v53_v12 }
 0x101   :  { %101 = vpow2.f32 %v54_v13 }
 0x107   :  { %v102_v14 = vpop.eup %101 }
 0x108   :  { %v56_v15 = vadd.f32 1.0, %v102_v14 }
 0x10a   :  { %103 = vrcp.f32 %v56_v15 }
 0x110   :  { %v104_v16 = vpop.eup %103 }
 0x111   :  { %71 = vperm.xlu1 %97, %v104_v16   ;;  %v58_v17 = vsub.f32 1.0, %v104_v16 }
 0x113   :  { %65 = vperm.xlu0 %96, %v58_v17  }
 0x183   :  { %v72_v21 = vpop.permute.xlu1 %71 }
 0x185   :  { %v66_v20 = vpop.permute.xlu0 %65 }
 0x186   :  { %v68_v22 = vsel %vm62_vm2, %v66_v20, 0.0 }
 0x187   :  { %v74_v23 = vsel %vm61_vm3, %v72_v21, %v68_v22 }
 0x188   :  { %75 = vst [vmem:[#allocation2] sm:$0xff] %v74_v23 }
 0x189   :  { %86 = dma.vmem_to_hbm [thread:$0]  %s82_s19, 128, %s84_s1, [#allocation3]  }
 0x18a   :  { %129 = dma.done.wait [#allocation3], 128  }
 0x18b   :  { %130 = vsyncadd [#allocation3], 4294967168 }
 0x18c   :  { %91 = vsyncpa [#allocation3], 1 }

</bundles_post_ra>
